<compile_context>
chip_gen: v5e
topology: v5e:2x2
jax: 0.10.0
libtpu: 0.0.40
codegen_flags: <defaults>
</compile_context>

<pallas_src>
import functools

import jax
import jax.numpy as jnp
from jax import lax
from jax.experimental import pallas as pl
from jax.experimental.pallas import tpu as pltpu

BN_EPS = 1e-5


def _row_tile(rows):
    """Largest convenient row tile (multiple of 8) that still gives >=2 grid steps."""
    for tr in (512, 256, 128, 64, 32, 16, 8):
        if rows % tr == 0 and rows // tr >= 2:
            return tr
    return rows  # fall back to a single block


def _band_matrix(w, length, lo):
    """Fold a 1-D conv (taps `w`: (size, cin, cout)) plus zero padding into a
    dense banded matrix M of shape (length*cin, length*cout):
      M[wi*cin+ci, wo*cout+co] = w[wi-wo+lo, ci, co] if 0 <= wi-wo+lo < size else 0.
    """
    size, cin, cout = w.shape
    wi = jnp.arange(length)[:, None]
    wo = jnp.arange(length)[None, :]
    dk = wi - wo + lo
    valid = (dk >= 0) & (dk < size)
    taps = jnp.where(valid[:, :, None, None], w[jnp.clip(dk, 0, size - 1)], 0.0)
    return jnp.transpose(taps, (0, 2, 1, 3)).reshape(length * cin, length * cout)


def _band_stage_kernel(x_ref, m_ref, b_ref, sc_ref, sh_ref, y_ref, st_ref):
    """(prev-BN affine) -> banded conv (single matmul) -> bias -> ReLU
       -> partial per-lane sum / sum-of-squares for this stage's BatchNorm."""
    x = x_ref[...] * sc_ref[...] + sh_ref[...]                 # per-lane affine
    y = jnp.dot(x, m_ref[...], preferred_element_type=jnp.float32)
    y = jnp.maximum(y + b_ref[...], 0.0)                       # bias + ReLU
    y_ref[...] = y.astype(y_ref.dtype)

    s = jnp.sum(y, axis=0, keepdims=True)                      # (1, Lout)
    ss = jnp.sum(y * y, axis=0, keepdims=True)                 # (1, Lout)
    ridx = lax.broadcasted_iota(jnp.int32, (8, y.shape[1]), 0)
    st = jnp.where(ridx < 4,
                   jnp.broadcast_to(s, (8, y.shape[1])),
                   jnp.broadcast_to(ss, (8, y.shape[1])))      # row 0: sum, row 4: sumsq
    st_ref[0] = st.astype(st_ref.dtype)


def _affine_kernel(x_ref, sc_ref, sh_ref, o_ref):
    o_ref[...] = (x_ref[...] * sc_ref[...] + sh_ref[...]).astype(o_ref.dtype)


def _band_stage(x2d, m, bias, scale_in, shift_in):
    rows, lin = x2d.shape
    lout = m.shape[1]
    tr = _row_tile(rows)
    nt = rows // tr
    y, stats = pl.pallas_call(
        _band_stage_kernel,
        grid=(nt,),
        in_specs=[
            pl.BlockSpec((tr, lin), lambda i: (i, 0)),
            pl.BlockSpec((lin, lout), lambda i: (0, 0)),
            pl.BlockSpec((1, lout), lambda i: (0, 0)),
            pl.BlockSpec((1, lin), lambda i: (0, 0)),
            pl.BlockSpec((1, lin), lambda i: (0, 0)),
        ],
        out_specs=[
            pl.BlockSpec((tr, lout), lambda i: (i, 0)),
            pl.BlockSpec((1, 8, lout), lambda i: (i, 0, 0)),
        ],
        out_shape=[
            jax.ShapeDtypeStruct((rows, lout), x2d.dtype),
            jax.ShapeDtypeStruct((nt, 8, lout), jnp.float32),
        ],
        compiler_params=pltpu.CompilerParams(
            dimension_semantics=("parallel",),
            vmem_limit_bytes=32 * 1024 * 1024,
        ),
    )(x2d, m, bias, scale_in, shift_in)
    return y, stats


def _affine(x2d, scale, shift):
    rows, cols = x2d.shape
    tr = _row_tile(rows)
    return pl.pallas_call(
        _affine_kernel,
        grid=(rows // tr,),
        in_specs=[
            pl.BlockSpec((tr, cols), lambda i: (i, 0)),
            pl.BlockSpec((1, cols), lambda i: (0, 0)),
            pl.BlockSpec((1, cols), lambda i: (0, 0)),
        ],
        out_specs=pl.BlockSpec((tr, cols), lambda i: (i, 0)),
        out_shape=jax.ShapeDtypeStruct((rows, cols), x2d.dtype),
        compiler_params=pltpu.CompilerParams(
            dimension_semantics=("parallel",),
            vmem_limit_bytes=32 * 1024 * 1024,
        ),
    )(x2d, scale, shift)


def _bn_scale_shift(stats, spatial, cout, count, gamma, beta, eps=BN_EPS):
    """Per-channel BN scale/shift (training mode, biased variance) from the
    per-tile partial sums emitted by the band-stage kernel."""
    lane_sum = jnp.sum(stats[:, 0, :], axis=0)
    lane_ss = jnp.sum(stats[:, 4, :], axis=0)
    ch_sum = lane_sum.reshape(spatial, cout).sum(axis=0)
    ch_ss = lane_ss.reshape(spatial, cout).sum(axis=0)
    mean = ch_sum / count
    var = jnp.maximum(ch_ss / count - mean * mean, 0.0)
    scale = gamma * lax.rsqrt(var + eps)
    shift = beta - mean * scale
    return scale, shift


def separated_conv2d_block(x_nchw, params, *, size=3):
    """Forward of SeparatedConv2DBlock. Public layout NCHW (matches PyTorch)."""
    n, cin, h, w = x_nchw.shape
    lo = (size - 1) // 2  # PyTorch pad: (lo, size - 1 - lo) for both parities

    w1 = params["w1"]
    cmid = w1.shape[-1]
    # NCHW -> NHWC -> (N*H, W*Cin): each row is one (n, h) line; lane = w*Cin + ci.
    x = jnp.transpose(x_nchw, (0, 2, 3, 1)).reshape(n * h, w * cin)

    # ---- stage 1: pad-W + conv(1,size) + bias + ReLU, partial BN1 stats ----
    m1 = _band_matrix(w1.astype(jnp.float32), w, lo)
    b1v = jnp.tile(params["b1"].astype(jnp.float32), w).reshape(1, w * cmid)
    one = jnp.ones((1, w * cin), jnp.float32)
    zero = jnp.zeros((1, w * cin), jnp.float32)
    y1, st1 = _band_stage(x, m1, b1v, one, zero)
    sc1, sh1 = _bn_scale_shift(st1, w, cmid, n * h * w,
                               params["g1"].astype(jnp.float32),
                               params["be1"].astype(jnp.float32))

    # Layout swap so the H-conv of stage 2 is the same banded matmul:
    # (N*H, W*Cmid) -> (N*W, H*Cmid)
    y1t = jnp.transpose(y1.reshape(n, h, w, cmid), (0, 2, 1, 3)).reshape(n * w, h * cmid)

    # ---- stage 2: BN1 affine + pad-H + conv(size,1) + bias + ReLU, BN2 stats ----
    w2 = params["w2"]
    cout = w2.shape[-1]
    m2 = _band_matrix(w2.astype(jnp.float32), h, lo)
    b2v = jnp.tile(params["b2"].astype(jnp.float32), h).reshape(1, h * cout)
    sc1v = jnp.tile(sc1, h).reshape(1, h * cmid)
    sh1v = jnp.tile(sh1, h).reshape(1, h * cmid)
    y2, st2 = _band_stage(y1t, m2, b2v, sc1v, sh1v)
    sc2, sh2 = _bn_scale_shift(st2, h, cout, n * h * w,
                               params["g2"].astype(jnp.float32),
                               params["be2"].astype(jnp.float32))

    # ---- BN2 normalize (small tiled elementwise kernel) ----
    z = _affine(y2,
                jnp.tile(sc2, h).reshape(1, h * cout),
                jnp.tile(sh2, h).reshape(1, h * cout))

    # (N*W, H*Cout) -> (N, Cout, H, W)
    out = jnp.transpose(z.reshape(n, w, h, cout), (0, 3, 2, 1))
    return out.astype(x_nchw.dtype)


def init_params(key, in_channels, *, size=3, down=False, dtype=jnp.float32):
    """Deterministic parameter init mirroring the PyTorch __init__ shapes.
    Conv weights stored as (size, Cin, Cout)."""
    half = in_channels // 2 if down else in_channels
    k1, k2, k3, k4 = jax.random.split(key, 4)

    fan_in1 = in_channels * 1 * size
    bound1 = (6.0 / fan_in1) ** 0.5                    # kaiming_uniform_, relu
    w1 = jax.random.uniform(k1, (size, in_channels, half), dtype, -bound1, bound1)
    bb1 = 1.0 / (fan_in1 ** 0.5)                       # default Conv2d bias init
    b1 = jax.random.uniform(k2, (half,), dtype, -bb1, bb1)

    fan_in2 = half * size * 1
    bound2 = (6.0 / fan_in2) ** 0.5
    w2 = jax.random.uniform(k3, (size, half, half), dtype, -bound2, bound2)
    bb2 = 1.0 / (fan_in2 ** 0.5)
    b2 = jax.random.uniform(k4, (half,), dtype, -bb2, bb2)

    return {
        "w1": w1, "b1": b1, "g1": jnp.ones((half,), dtype), "be1": jnp.zeros((half,), dtype),
        "w2": w2, "b2": b2, "g2": jnp.ones((half,), dtype), "be2": jnp.zeros((half,), dtype),
    }


def _reference(x_nchw, params, *, size=3):
    """Pure-JAX reference (same math, no Pallas) for validation."""
    x = jnp.transpose(x_nchw, (0, 2, 3, 1)).astype(jnp.float32)
    lo, hi = (size - 1) // 2, size // 2

    def stage(xin, w, b, g, be, axis):
        pad = [(0, 0)] * 4
        pad[axis] = (lo, hi)
        xp = jnp.pad(xin, pad)
        out_len = xin.shape[axis]
        acc = 0.0
        for dk in range(size):
            sl = [slice(None)] * 4
            sl[axis] = slice(dk, dk + out_len)
            acc = acc + jnp.einsum("nhwc,co->nhwo", xp[tuple(sl)], w[dk])
        y = jnp.maximum(acc + b.reshape(1, 1, 1, -1), 0.0)
        mean = jnp.mean(y, axis=(0, 1, 2), keepdims=True)
        var = jnp.mean((y - mean) ** 2, axis=(0, 1, 2), keepdims=True)
        return ((y - mean) * lax.rsqrt(var + BN_EPS) * g.reshape(1, 1, 1, -1)
                + be.reshape(1, 1, 1, -1))

    y = stage(x, params["w1"], params["b1"], params["g1"], params["be1"], axis=2)
    z = stage(y, params["w2"], params["b2"], params["g2"], params["be2"], axis=1)
    return jnp.transpose(z, (0, 3, 1, 2))


if __name__ == "__main__":
    key = jax.random.PRNGKey(0)
    kx, kp = jax.random.split(key)

    N, C, H, W = 2, 4, 16, 16
    SIZE = 3
    x = jax.random.normal(kx, (N, C, H, W), jnp.float32)
    params = init_params(kp, C, size=SIZE, down=False)

    fwd = jax.jit(functools.partial(separated_conv2d_block, size=SIZE))
    out = jax.block_until_ready(fwd(x, params))

    ref = _reference(x, params, size=SIZE)
    assert out.shape == (N, C, H, W), out.shape
    err = float(jnp.max(jnp.abs(out - ref)))
    assert err < 2e-4, err

    print("KERNEL_OK")
</pallas_src>

<mosaic_0001>
module attributes {stable_mosaic.version = 11 : i64} {
  func.func @_band_stage_kernel(%arg0: i32, %arg1: memref<16x64xf32, #tpu.memory_space<vmem>>, %arg2: memref<64x64xf32, #tpu.memory_space<vmem>>, %arg3: memref<1x64xf32, #tpu.memory_space<vmem>>, %arg4: memref<1x64xf32, #tpu.memory_space<vmem>>, %arg5: memref<1x64xf32, #tpu.memory_space<vmem>>, %arg6: memref<16x64xf32, #tpu.memory_space<vmem>>, %arg7: memref<1x8x64xf32, #tpu.memory_space<vmem>>) attributes {dimension_semantics = [#tpu.dimension_semantics<parallel>], iteration_bounds = array<i64: 2>, scalar_prefetch = 0 : i64, scratch_operands = 0 : i64, tpu.core_type = #tpu.core_type<tc>, window_params = [{transform_indices = @transform_0, window_bounds = array<i64: 16, 64>}, {pipeline_mode = #tpu.pipeline_mode<synchronous>, transform_indices = @transform_1, window_bounds = array<i64: 64, 64>}, {pipeline_mode = #tpu.pipeline_mode<synchronous>, transform_indices = @transform_2, window_bounds = array<i64: 1, 64>}, {pipeline_mode = #tpu.pipeline_mode<synchronous>, transform_indices = @transform_3, window_bounds = array<i64: 1, 64>}, {pipeline_mode = #tpu.pipeline_mode<synchronous>, transform_indices = @transform_4, window_bounds = array<i64: 1, 64>}, {transform_indices = @transform_5, window_bounds = array<i64: 16, 64>}, {transform_indices = @transform_6, window_bounds = array<i64: 1, 8, 64>}]} {
    %c0 = arith.constant 0 : index
    %c0_0 = arith.constant 0 : index
    %0 = vector.load %arg1[%c0, %c0_0] : memref<16x64xf32, #tpu.memory_space<vmem>>, vector<16x64xf32>
    %c0_1 = arith.constant 0 : index
    %c0_2 = arith.constant 0 : index
    %1 = vector.load %arg4[%c0_1, %c0_2] : memref<1x64xf32, #tpu.memory_space<vmem>>, vector<1x64xf32>
    %2 = vector.broadcast %1 : vector<1x64xf32> to vector<16x64xf32>
    %3 = arith.mulf %0, %2 : vector<16x64xf32>
    %c0_3 = arith.constant 0 : index
    %c0_4 = arith.constant 0 : index
    %4 = vector.load %arg5[%c0_3, %c0_4] : memref<1x64xf32, #tpu.memory_space<vmem>>, vector<1x64xf32>
    %5 = vector.broadcast %4 : vector<1x64xf32> to vector<16x64xf32>
    %6 = arith.addf %3, %5 : vector<16x64xf32>
    %c0_5 = arith.constant 0 : index
    %c0_6 = arith.constant 0 : index
    %7 = vector.load %arg2[%c0_5, %c0_6] : memref<64x64xf32, #tpu.memory_space<vmem>>, vector<64x64xf32>
    %cst = arith.constant dense<0.000000e+00> : vector<16x64xf32>
    %8 = tpu.matmul %6, %7, %cst {dimension_numbers = #tpu.dot_dimension_numbers<[1], [0], [0], [1], [0, 0, 1, 1], [], []>} : vector<16x64xf32>, vector<64x64xf32>, vector<16x64xf32> -> vector<16x64xf32>
    %c0_7 = arith.constant 0 : index
    %c0_8 = arith.constant 0 : index
    %9 = vector.load %arg3[%c0_7, %c0_8] : memref<1x64xf32, #tpu.memory_space<vmem>>, vector<1x64xf32>
    %10 = vector.broadcast %9 : vector<1x64xf32> to vector<16x64xf32>
    %11 = arith.addf %8, %10 : vector<16x64xf32>
    %cst_9 = arith.constant 0.000000e+00 : f32
    %12 = vector.broadcast %cst_9 : f32 to vector<16x64xf32>
    %13 = arith.maximumf %11, %12 : vector<16x64xf32>
    %c0_10 = arith.constant 0 : index
    %c0_11 = arith.constant 0 : index
    %14 = vector.load %arg6[%c0_10, %c0_11] : memref<16x64xf32, #tpu.memory_space<vmem>>, vector<16x64xf32>
    tpu.vector_store %arg6[%c0_10, %c0_11], %13 {strides = array<i32>} : memref<16x64xf32, #tpu.memory_space<vmem>>, vector<16x64xf32>,
    %cst_12 = arith.constant dense<0.000000e+00> : vector<64xf32>
    %15 = vector.multi_reduction <add>, %13, %cst_12 [0] : vector<16x64xf32> to vector<64xf32>
    %16 = vector.shape_cast %15 : vector<64xf32> to vector<1x64xf32>
    %17 = arith.mulf %13, %13 : vector<16x64xf32>
    %cst_13 = arith.constant dense<0.000000e+00> : vector<64xf32>
    %18 = vector.multi_reduction <add>, %17, %cst_13 [0] : vector<16x64xf32> to vector<64xf32>
    %19 = vector.shape_cast %18 : vector<64xf32> to vector<1x64xf32>
    %20 = tpu.iota {dimensions = array<i32: 0>} : vector<8x64xi32>
    %c4_i32 = arith.constant 4 : i32
    %21 = vector.broadcast %c4_i32 : i32 to vector<8x64xi32>
    %22 = arith.cmpi slt, %20, %21 : vector<8x64xi32>
    %23 = vector.shape_cast %16 : vector<1x64xf32> to vector<1x64xf32>
    %24 = vector.broadcast %23 : vector<1x64xf32> to vector<8x64xf32>
    %25 = vector.shape_cast %19 : vector<1x64xf32> to vector<1x64xf32>
    %26 = vector.broadcast %25 : vector<1x64xf32> to vector<8x64xf32>
    %27 = arith.select %22, %24, %26 : vector<8x64xi1>, vector<8x64xf32>
    %c0_14 = arith.constant 0 : index
    %c0_15 = arith.constant 0 : index
    %c0_16 = arith.constant 0 : index
    %28 = vector.load %arg7[%c0_14, %c0_15, %c0_16] : memref<1x8x64xf32, #tpu.memory_space<vmem>>, vector<1x8x64xf32>
    %29 = vector.shape_cast %28 : vector<1x8x64xf32> to vector<8x64xf32>
    %30 = vector.shape_cast %27 : vector<8x64xf32> to vector<1x8x64xf32>
    tpu.vector_store %arg7[%c0_14, %c0_15, %c0_16], %30 {strides = array<i32>} : memref<1x8x64xf32, #tpu.memory_space<vmem>>, vector<1x8x64xf32>,
    return
  }
  func.func @transform_0(%arg0: i32) -> (i32, i32) {
    %c0_i32 = arith.constant 0 : i32
    %c0_i32_0 = arith.constant 0 : i32
    return %arg0, %c0_i32 : i32, i32
  }
  func.func @transform_1(%arg0: i32) -> (i32, i32) {
    %c0_i32 = arith.constant 0 : i32
    %c0_i32_0 = arith.constant 0 : i32
    %c0_i32_1 = arith.constant 0 : i32
    return %c0_i32, %c0_i32_0 : i32, i32
  }
  func.func @transform_2(%arg0: i32) -> (i32, i32) {
    %c0_i32 = arith.constant 0 : i32
    %c0_i32_0 = arith.constant 0 : i32
    %c0_i32_1 = arith.constant 0 : i32
    return %c0_i32, %c0_i32_0 : i32, i32
  }
  func.func @transform_3(%arg0: i32) -> (i32, i32) {
    %c0_i32 = arith.constant 0 : i32
    %c0_i32_0 = arith.constant 0 : i32
    %c0_i32_1 = arith.constant 0 : i32
    return %c0_i32, %c0_i32_0 : i32, i32
  }
  func.func @transform_4(%arg0: i32) -> (i32, i32) {
    %c0_i32 = arith.constant 0 : i32
    %c0_i32_0 = arith.constant 0 : i32
    %c0_i32_1 = arith.constant 0 : i32
    return %c0_i32, %c0_i32_0 : i32, i32
  }
  func.func @transform_5(%arg0: i32) -> (i32, i32) {
    %c0_i32 = arith.constant 0 : i32
    %c0_i32_0 = arith.constant 0 : i32
    return %arg0, %c0_i32 : i32, i32
  }
  func.func @transform_6(%arg0: i32) -> (i32, i32, i32) {
    %c0_i32 = arith.constant 0 : i32
    %c0_i32_0 = arith.constant 0 : i32
    %c0_i32_1 = arith.constant 0 : i32
    return %arg0, %c0_i32, %c0_i32_0 : i32, i32, i32
  }
}

module attributes {stable_mosaic.version = 11 : i64} {
  func.func @_affine_kernel(%arg0: i32, %arg1: memref<16x64xf32, #tpu.memory_space<vmem>>, %arg2: memref<1x64xf32, #tpu.memory_space<vmem>>, %arg3: memref<1x64xf32, #tpu.memory_space<vmem>>, %arg4: memref<16x64xf32, #tpu.memory_space<vmem>>) attributes {dimension_semantics = [#tpu.dimension_semantics<parallel>], iteration_bounds = array<i64: 2>, scalar_prefetch = 0 : i64, scratch_operands = 0 : i64, tpu.core_type = #tpu.core_type<tc>, window_params = [{transform_indices = @transform_0, window_bounds = array<i64: 16, 64>}, {pipeline_mode = #tpu.pipeline_mode<synchronous>, transform_indices = @transform_1, window_bounds = array<i64: 1, 64>}, {pipeline_mode = #tpu.pipeline_mode<synchronous>, transform_indices = @transform_2, window_bounds = array<i64: 1, 64>}, {transform_indices = @transform_3, window_bounds = array<i64: 16, 64>}]} {
    %c0 = arith.constant 0 : index
    %c0_0 = arith.constant 0 : index
    %0 = vector.load %arg1[%c0, %c0_0] : memref<16x64xf32, #tpu.memory_space<vmem>>, vector<16x64xf32>
    %c0_1 = arith.constant 0 : index
    %c0_2 = arith.constant 0 : index
    %1 = vector.load %arg2[%c0_1, %c0_2] : memref<1x64xf32, #tpu.memory_space<vmem>>, vector<1x64xf32>
    %2 = vector.broadcast %1 : vector<1x64xf32> to vector<16x64xf32>
    %3 = arith.mulf %0, %2 : vector<16x64xf32>
    %c0_3 = arith.constant 0 : index
    %c0_4 = arith.constant 0 : index
    %4 = vector.load %arg3[%c0_3, %c0_4] : memref<1x64xf32, #tpu.memory_space<vmem>>, vector<1x64xf32>
    %5 = vector.broadcast %4 : vector<1x64xf32> to vector<16x64xf32>
    %6 = arith.addf %3, %5 : vector<16x64xf32>
    %c0_5 = arith.constant 0 : index
    %c0_6 = arith.constant 0 : index
    %7 = vector.load %arg4[%c0_5, %c0_6] : memref<16x64xf32, #tpu.memory_space<vmem>>, vector<16x64xf32>
    tpu.vector_store %arg4[%c0_5, %c0_6], %6 {strides = array<i32>} : memref<16x64xf32, #tpu.memory_space<vmem>>, vector<16x64xf32>,
    return
  }
  func.func @transform_0(%arg0: i32) -> (i32, i32) {
    %c0_i32 = arith.constant 0 : i32
    %c0_i32_0 = arith.constant 0 : i32
    return %arg0, %c0_i32 : i32, i32
  }
  func.func @transform_1(%arg0: i32) -> (i32, i32) {
    %c0_i32 = arith.constant 0 : i32
    %c0_i32_0 = arith.constant 0 : i32
    %c0_i32_1 = arith.constant 0 : i32
    return %c0_i32, %c0_i32_0 : i32, i32
  }
  func.func @transform_2(%arg0: i32) -> (i32, i32) {
    %c0_i32 = arith.constant 0 : i32
    %c0_i32_0 = arith.constant 0 : i32
    %c0_i32_1 = arith.constant 0 : i32
    return %c0_i32, %c0_i32_0 : i32, i32
  }
  func.func @transform_3(%arg0: i32) -> (i32, i32) {
    %c0_i32 = arith.constant 0 : i32
    %c0_i32_0 = arith.constant 0 : i32
    return %arg0, %c0_i32 : i32, i32
  }
}

</mosaic_0001>

<bundles_post_ra>
// kernel: tile.33
= control target key start
LH: loop header
LB: loop body
LE: loop exit
PB: predicated region body
PF: predicated region fallthrough
CT: control target
= control target key end

     0   :  { %s28_s0 = inlined_call_operand.vmem [shape: f32[4], index: 0, kind: input, shape index: {}]   ;;  %s29_s1 = inlined_call_operand.vmem [shape: f32[16,4], index: 1, kind: output, shape index: {}]  }
   0x1   :  { %v4_v0 = vld [vmem:[%s28_s0] ss:$0 sm:$0xff] }
   0x2   :  { %5 = vst [vmem:[%s29_s1] sm:$0xff] %v4_v0 }
   0x3   :  { %8 = vst [vmem:[%s29_s1 + $0x8] sm:$0xff] %v4_v0 }

// kernel: tile.34
= control target key start
LH: loop header
LB: loop body
LE: loop exit
PB: predicated region body
PF: predicated region fallthrough
CT: control target
= control target key end

     0   :  { %s131_s10 = smov 60   ;;  %s132_s11 = smov 52   ;;  %vm3_vm0 = vcmask 31744   ;;  %vm9_vm1 = vcmask 523744   ;;  %vm15_vm2 = vcmask 490944   ;;  %vm21_vm3 = vcmask 458144   ;;  %s207_s0 = inlined_call_operand.vmem [shape: f32[16,4], index: 0, kind: input, shape index: {}]   ;;  %s208_s1 = inlined_call_operand.vmem [shape: f32[1,64], index: 1, kind: output, shape index: {}]  }
   0x1   :  { %v101_v0 = vld [vmem:[%s207_s0 + $0xf] sm:$0x1]   ;;  %v103_v1 = vld [vmem:[%s207_s0 + $0xd] sm:$0x1]   ;;  %v105_v2 = vld [vmem:[%s207_s0 + $0xb] sm:$0x1]  }
   0x2   :  { %7 = vrot.lane.b32.xlu0 %v101_v0, %s131_s10  ;;  %19 = vrot.lane.b32.xlu1 %v103_v1, %s132_s11  ;;  %s133_s14 = smov 44   ;;  %v102_v3 = vld [vmem:[%s207_s0 + $0xe] sm:$0x1]   ;;  %v104_v4 = vld [vmem:[%s207_s0 + $0xc] sm:$0x1]   ;;  %s134_s19 = smov 56  }
   0x3   :  { %31 = vrot.lane.b32.xlu2 %v105_v2, %s133_s14  ;;  %s135_s20 = smov 48   ;;  %v106_v5 = vld [vmem:[%s207_s0 + $0xa] sm:$0x1]   ;;  %s136_s23 = smov 40   ;;  %v107_v6 = vld [vmem:[%s207_s0 + $0x9] sm:$0x1]  }
   0x4   :  { %v108_v7 = vld [vmem:[%s207_s0 + $0x8] sm:$0x1]   ;;  %s137_s28 = smov 36   ;;  %s138_s29 = smov 32   ;;  %v109_v8 = vld [vmem:[%s207_s0 + $0x7] sm:$0x1]  }
   0x5   :  { %s139_s3 = smov 28   ;;  %v110_v9 = vld [vmem:[%s207_s0 + $0x6] sm:$0x1]   ;;  %v111_v10 = vld [vmem:[%s207_s0 + $0x5] sm:$0x1]   ;;  %s140_s8 = smov 24  }
   0x6   :  { %s141_s9 = smov 20   ;;  %v112_v11 = vld [vmem:[%s207_s0 + $0x4] sm:$0x1]   ;;  %s142_s12 = smov 16   ;;  %v113_v12 = vld [vmem:[%s207_s0 + $0x3] sm:$0x1]  }
   0x7   :  { %v114_v13 = vld [vmem:[%s207_s0 + $0x2] sm:$0x1]   ;;  %s143_s17 = smov 12   ;;  %s144_s18 = smov 8   ;;  %v115_v14 = vld [vmem:[%s207_s0 + $0x1] sm:$0x1]  }
   0x8   :  { %s145_s21 = smov 4   ;;  %v2_v15 = vld [vmem:[%s207_s0] sm:$0x1]   ;;  %vm27_vm4 = vcmask 425344   ;;  %vm33_vm5 = vcmask 392544   ;;  %vm39_vm6 = vcmask 359744  }
   0x9   :  { %4 = vst.msk [vmem:[#allocation0] sm:$0x1] %vm3_vm0, %v2_v15   ;;  %vm45_vm7 = vcmask 326944   ;;  %vm51_vm8 = vcmask 294144   ;;  %vm57_vm9 = vcmask 261344   ;;  %vm63_vm10 = vcmask 228544  }
   0xa   :  { %13 = vrot.lane.b32.xlu0 %v102_v3, %s134_s19  ;;  %25 = vrot.lane.b32.xlu1 %v104_v4, %s135_s20  ;;  %vm69_vm11 = vcmask 195744   ;;  %vm75_vm12 = vcmask 162944   ;;  %vm81_vm13 = vcmask 130144   ;;  %vm87_vm14 = vcmask 97344  }
   0xb   :  { %37 = vrot.lane.b32.xlu2 %v106_v5, %s136_s23  ;;  %vm93_vm15 = vcmask 64544  }
  0x12   :  { %43 = vrot.lane.b32.xlu0 %v107_v6, %s137_s28  ;;  %49 = vrot.lane.b32.xlu1 %v108_v7, %s138_s29 }
  0x13   :  { %55 = vrot.lane.b32.xlu2 %v109_v8, %s139_s3 }
  0x1a   :  { %61 = vrot.lane.b32.xlu0 %v110_v9, %s140_s8  ;;  %67 = vrot.lane.b32.xlu1 %v111_v10, %s141_s9 }
  0x1b   :  { %73 = vrot.lane.b32.xlu2 %v112_v11, %s142_s12 }
  0x22   :  { %79 = vrot.lane.b32.xlu0 %v113_v12, %s143_s17  ;;  %85 = vrot.lane.b32.xlu1 %v114_v13, %s144_s18 }
  0x23   :  { %91 = vrot.lane.b32.xlu2 %v115_v14, %s145_s21 }
  0x5d   :  { %v32_v16 = vpop.permute.xlu2 %31  }
  0x65   :  { %v38_v17 = vpop.permute.xlu2 %37  }
  0x6d   :  { %v56_v18 = vpop.permute.xlu2 %55  }
  0x74   :  { %v8_v19 = vpop.permute.xlu0 %7   ;;  %v20_v20 = vpop.permute.xlu1 %19  }
  0x75   :  { %10 = vst.msk [vmem:[#allocation0] sm:$0x1] %vm9_vm1, %v8_v19   ;;  %v74_v21 = vpop.permute.xlu2 %73  }
  0x7c   :  { %v14_v22 = vpop.permute.xlu0 %13   ;;  %v26_v23 = vpop.permute.xlu1 %25  }
  0x7d   :  { %16 = vst.msk [vmem:[#allocation0] sm:$0x1] %vm15_vm2, %v14_v22   ;;  %v92_v24 = vpop.permute.xlu2 %91  }
  0x7e   :  { %22 = vst.msk [vmem:[#allocation0] sm:$0x1] %vm21_vm3, %v20_v20  }
  0x7f   :  { %28 = vst.msk [vmem:[#allocation0] sm:$0x1] %vm27_vm4, %v26_v23  }
  0x80   :  { %34 = vst.msk [vmem:[#allocation0] sm:$0x1] %vm33_vm5, %v32_v16  }
  0x81   :  { %40 = vst.msk [vmem:[#allocation0] sm:$0x1] %vm39_vm6, %v38_v17  }
  0x84   :  { %v44_v25 = vpop.permute.xlu0 %43   ;;  %v50_v26 = vpop.permute.xlu1 %49  }
  0x85   :  { %46 = vst.msk [vmem:[#allocation0] sm:$0x1] %vm45_vm7, %v44_v25  }
  0x86   :  { %52 = vst.msk [vmem:[#allocation0] sm:$0x1] %vm51_vm8, %v50_v26  }
  0x87   :  { %58 = vst.msk [vmem:[#allocation0] sm:$0x1] %vm57_vm9, %v56_v18  }
  0x8c   :  { %v62_v27 = vpop.permute.xlu0 %61   ;;  %v68_v28 = vpop.permute.xlu1 %67  }
  0x8d   :  { %64 = vst.msk [vmem:[#allocation0] sm:$0x1] %vm63_vm10, %v62_v27  }
  0x8e   :  { %70 = vst.msk [vmem:[#allocation0] sm:$0x1] %vm69_vm11, %v68_v28  }
  0x8f   :  { %76 = vst.msk [vmem:[#allocation0] sm:$0x1] %vm75_vm12, %v74_v21  }
  0x94   :  { %v80_v29 = vpop.permute.xlu0 %79   ;;  %v86_v30 = vpop.permute.xlu1 %85  }
  0x95   :  { %82 = vst.msk [vmem:[#allocation0] sm:$0x1] %vm81_vm13, %v80_v29  }
  0x96   :  { %88 = vst.msk [vmem:[#allocation0] sm:$0x1] %vm87_vm14, %v86_v30  }
  0x97   :  { %94 = vst.msk [vmem:[#allocation0] sm:$0x1] %vm93_vm15, %v92_v24  }
  0x9e   :  { %v97_v31 = vld [vmem:[#allocation0] sm:$0x1] }
  0x9f   :  { %100 = vst [vmem:[%s208_s1] sm:$0x1] %v97_v31 }

// kernel: separated_conv2d_block.3
= control target key start
LH: loop header
LB: loop body
LE: loop exit
PB: predicated region body
PF: predicated region fallthrough
CT: control target
= control target key end

     0   :  { %s514_s21 = smov 0   ;;  %s588_s0 = inlined_call_operand.vmem [shape: f32[32,64], index: 0, kind: input, shape index: {}]   ;;  %s589_s1 = inlined_call_operand.vmem [shape: f32[64,64], index: 1, kind: input, shape index: {}]   ;;  %s590_s2 = inlined_call_operand.vmem [shape: f32[1,64], index: 2, kind: input, shape index: {}]   ;;  %s591_s3 = inlined_call_operand.vmem [shape: f32[1,64], index: 3, kind: input, shape index: {}]   ;;  %s592_s4 = inlined_call_operand.vmem [shape: f32[1,64], index: 4, kind: input, shape index: {}]   ;;  %s593_s5 = inlined_call_operand.vmem [shape: f32[32,64], index: 5, kind: output, shape index: {0}]   ;;  %s594_s6 = inlined_call_operand.vmem [shape: f32[2,8,64], index: 6, kind: output, shape index: {1}]  }
   0x1 LB: > { %s520_s22 = sadd.s32 4294967295, %s477_s21   ;;  %p442_p0 = scmp.ge.s32.totalorder %s477_s21, 1  ;;  %s477_s21 = sphi %s514_s21, %s17_s21  }
   0x2   : > { %p216_p1 = scmp.lt.s32.totalorder %s477_s21, 3 }
   0x4   : > { %p217_p2 = pnand %p442_p0, %p216_p1 }
   0x5   : > { %s443_s27 = sshll.u32 (!%p217_p2), %s520_s22, 1  ;;  %p262_p4 = scmp.lt.s32.totalorder (!%p217_p2), %s520_s22, 1 }
   0x6   : > { %220 = sbr.rel (%p217_p2) target bundleno = 176 (0xb0), region = 40  ;;  %p251_p3 = scmp.lt.s32.totalorder (!%p217_p2), %s443_s27, 3 }
   0xb   : > { %v287_v0 = vld [vmem:[%s589_s1 + $0x38] sm:$0xff]  ;;  %v286_v1 = vld [vmem:[%s589_s1 + $0x30] sm:$0xff]  ;;  %v285_v2 = vld [vmem:[%s589_s1 + $0x28] sm:$0xff]  ;;  %s596_s27 = smov (!%p251_p3, %s443_s27), 3  ;;  %vm292_vm0 = vcmask 523264   ;;  %v346_v34 = vlaneseq  ;;  %s598_s22 = smov (!%p262_p4, %s520_s22), 1 }
   0xc   : > { %307 = vmatpush.msra.mxu0 %v287_v0  ;;  %452 = vmatpush.msra.mxu1 %v287_v0  ;;  %v284_v3 = vld [vmem:[%s589_s1 + $0x20] sm:$0xff]  ;;  %s444_s10 = sshll.u32 %s596_s27, 3  ;;  %v283_v5 = vld [vmem:[%s589_s1 + $0x18] sm:$0xff]  ;;  %v282_v8 = vld [vmem:[%s589_s1 + $0x10] sm:$0xff]  ;;  %s447_s27 = sshll.u32 %s598_s22, 3 }
   0xd   : > { %v468_v4 = vld [vmem:[%s591_s3] ss:$0 sm:$0xff]  ;;  %s254_s15 = scalar_lea.vmem %s588_s0, %s444_s10  ;;  %v281_v12 = vld [vmem:[%s589_s1 + $0x8] sm:$0xff]  ;;  %s260_s7 = scalar_lea.vmem %s593_s5, %s444_s10  ;;  %v347_v39 = vshrl.u32 %v346_v34, 7 }
   0xe   : > { %308 = vmatpush.msra.mxu0 %v286_v1  ;;  %453 = vmatpush.msra.mxu1 %v286_v1  ;;  %v266_v6 = vld [vmem:[%s254_s15] sm:$0xff]  ;;  %v267_v7 = vld [vmem:[%s254_s15 + $0x8] sm:$0xff]  ;;  %s265_s10 = scalar_lea.vmem %s594_s6, %s447_s27 }
   0xf   : > { %v272_v9 = vmul.f32 %v468_v4, %v266_v6  ;;  %v469_v10 = vld [vmem:[%s592_s4] ss:$0 sm:$0xff]  ;;  %v273_v11 = vmul.f32 %v468_v4, %v267_v7  ;;  %vm348_vm1 = vcmp.lt.s32.totalorder %v347_v39, 4 }
  0x10   : > { %309 = vmatpush.msra.mxu0 %v285_v2  ;;  %454 = vmatpush.msra.mxu1 %v285_v2  ;;  %v280_v13 = vld [vmem:[%s589_s1] sm:$0xff] }
  0x11   : > { %v278_v14 = vadd.f32 %v469_v10, %v272_v9  ;;  %v279_v15 = vadd.f32 %v469_v10, %v273_v11  ;;  %v470_v16 = vld [vmem:[%s590_s2] ss:$0 sm:$0xff] }
  0x12   : > { %310 = vmatpush.msra.mxu0 %v284_v3  ;;  %455 = vmatpush.msra.mxu1 %v284_v3 }
  0x14   : > { %311 = vmatpush.msra.mxu0 %v283_v5  ;;  %456 = vmatpush.msra.mxu1 %v283_v5 }
  0x16   : > { %312 = vmatpush.msra.mxu0 %v282_v8  ;;  %457 = vmatpush.msra.mxu1 %v282_v8 }
  0x18   : > { %313 = vmatpush.msra.mxu0 %v281_v12  ;;  %458 = vmatpush.msra.mxu1 %v281_v12 }
  0x1a   : > { %314 = vmatpush.msra.mxu0 %v280_v13  ;;  %459 = vmatpush.msra.mxu1 %v280_v13 }
  0x1b   : > { %448 = vmatmul.msk.f32.vlgmr.msra.gmra.mxu0 %vm292_vm0, %v278_v14  ;;  %449 = vmatmul.msk.f32.vlgmr.msra.gmra.mxu1 %vm292_vm0, %v279_v15 }
  0x98   : > { %v316_v17 = vpop.f32.mrf.mxu0  ;;  %v319_v18 = vpop.f32.mrf.mxu1 }
  0x99   : > { %v317_v19 = vadd.f32 %v470_v16, %v316_v17  ;;  %v320_v20 = vadd.f32 %v470_v16, %v319_v18 }
  0x9b   : > { %v322_v21 = vmax.f32 %v317_v19, 0.0  ;;  %v323_v22 = vmax.f32 %v320_v20, 0.0 }
  0x9d   : > { %324 = vst.msk [vmem:[%s260_s7] sm:$0xff] %vm292_vm0, %v322_v21  ;;  %v326_v23 = vsel %vm292_vm0, %v322_v21, 0.0  ;;  %v335_v24 = vmul.f32 %v322_v21, %v322_v21  ;;  %v327_v25 = vsel %vm292_vm0, %v323_v22, 0.0  ;;  %v336_v26 = vmul.f32 %v323_v22, %v323_v22 }
  0x9e   : > { %325 = vst.msk [vmem:[%s260_s7 + $0x8] sm:$0xff] %vm292_vm0, %v323_v22  ;;  %v328_v27 = vadd.f32 %v327_v25, %v326_v23 }
  0x9f   : > { %v337_v28 = vsel %vm292_vm0, %v335_v24, 0.0  ;;  %v338_v29 = vsel %vm292_vm0, %v336_v26, 0.0 }
  0xa0   : > { %v329_v30 = vrot.slane %v328_v27, 4  ;;  %v339_v31 = vadd.f32 %v338_v29, %v337_v28 }
  0xa2   : > { %v330_v32 = vadd.f32 %v329_v30, %v328_v27  ;;  %v340_v33 = vrot.slane %v339_v31, 4 }
  0xa4   : > { %v331_v35 = vrot.slane %v330_v32, 2  ;;  %v341_v36 = vadd.f32 %v340_v33, %v339_v31 }
  0xa6   : > { %v332_v37 = vadd.f32 %v331_v35, %v330_v32  ;;  %v342_v38 = vrot.slane %v341_v36, 2 }
  0xa8   : > { %v333_v40 = vrot.slane %v332_v37, 1  ;;  %v343_v41 = vadd.f32 %v342_v38, %v341_v36 }
  0xaa   : > { %v344_v42 = vrot.slane %v343_v41, 1  ;;  %v334_v43 = vadd.f32 %v333_v40, %v332_v37 }
  0xac   : > { %v345_v44 = vadd.f32 %v344_v42, %v343_v41 }
  0xae   : > { %v349_v45 = vsel %vm348_vm1, %v334_v43, %v345_v44 }
  0xaf   : > { %350 = vst.msk [vmem:[%s265_s10] sm:$0xff] %vm292_vm0, %v349_v45 }
  0xb0 PF: > { %s17_s21 = sadd.s32 1, %s477_s21  }
  0xb1   : > { %p14_p5 = scmp.ge.s32.totalorder %s17_s21, 4  }
  0xb3   :  { %16 = sbr.rel (!%p14_p5) target bundleno = 1 (0x1), region = 82 }

// kernel: separated_conv2d_block.5
= control target key start
LH: loop header
LB: loop body
LE: loop exit
PB: predicated region body
PF: predicated region fallthrough
CT: control target
= control target key end

     0   :  { %s296_s12 = smov 0   ;;  %s313_s0 = inlined_call_operand.vmem [shape: f32[32,64], index: 0, kind: input, shape index: {}]   ;;  %s314_s1 = inlined_call_operand.vmem [shape: f32[1,64], index: 1, kind: input, shape index: {}]   ;;  %s315_s2 = inlined_call_operand.vmem [shape: f32[1,64], index: 2, kind: input, shape index: {}]   ;;  %s316_s3 = inlined_call_operand.vmem [shape: f32[32,64], index: 3, kind: output, shape index: {}]  }
   0x1 LB: > { %s247_s13 = sadd.s32 4294967295, %s274_s12   ;;  %p251_p0 = scmp.ge.s32.totalorder %s274_s12, 1  ;;  %s274_s12 = sphi %s296_s12, %s13_s12  }
   0x2   : > { %p138_p1 = scmp.lt.s32.totalorder %s274_s12, 3 }
   0x4   : > { %p139_p2 = pnand %p251_p0, %p138_p1 }
   0x5   : > { %s252_s14 = sshll.u32 (!%p139_p2), %s247_s13, 1 }
   0x6   : > { %142 = sbr.rel (%p139_p2) target bundleno = 21 (0x15), region = 32  ;;  %p163_p3 = scmp.lt.s32.totalorder (!%p139_p2), %s252_s14, 3 }
   0xb   : > { %s318_s14 = smov (!%p163_p3, %s252_s14), 3  ;;  %v266_v0 = vld [vmem:[%s314_s1] ss:$0 sm:$0xff]  ;;  %vm188_vm0 = vcmask 523264  }
   0xc   : > { %s253_s17 = sshll.u32 %s318_s14, 3  ;;  %v267_v1 = vld [vmem:[%s315_s2] ss:$0 sm:$0xff] }
   0xd   : > { %s166_s20 = scalar_lea.vmem %s313_s0, %s253_s17  ;;  %s172_s25 = scalar_lea.vmem %s316_s3, %s253_s17 }
   0xe   : > { %v174_v2 = vld [vmem:[%s166_s20] sm:$0xff]  ;;  %v175_v3 = vld [vmem:[%s166_s20 + $0x8] sm:$0xff] }
   0xf   : > { %v180_v4 = vmul.f32 %v266_v0, %v174_v2  ;;  %v181_v5 = vmul.f32 %v266_v0, %v175_v3 }
  0x11   : > { %v186_v6 = vadd.f32 %v267_v1, %v180_v4  ;;  %v187_v7 = vadd.f32 %v267_v1, %v181_v5 }
  0x13   : > { %189 = vst.msk [vmem:[%s172_s25] sm:$0xff] %vm188_vm0, %v186_v6 }
  0x14   : > { %190 = vst.msk [vmem:[%s172_s25 + $0x8] sm:$0xff] %vm188_vm0, %v187_v7 }
  0x15 PF: > { %s13_s12 = sadd.s32 1, %s274_s12  }
  0x16   : > { %p10_p4 = scmp.ge.s32.totalorder %s13_s12, 4  }
  0x18   :  { %12 = sbr.rel (!%p10_p4) target bundleno = 1 (0x1), region = 62 }

</bundles_post_ra>
